<compile_context>
chip_gen: v7x
topology: tpu7x:2x2x1
jax: 0.10.0
libtpu: 0.0.40
codegen_flags: <defaults>
</compile_context>

<pallas_src>
import functools

import jax
import jax.numpy as jnp
from jax.experimental import pallas as pl
from jax.experimental.pallas import tpu as pltpu

D_IN = 512
D_HID = 512
D_OUT = 10
D_OUT_PAD = 128  # lane-dense padded logits width


def label_predictor_kernel(h_ref, w1_ref, b1_ref, w2_ref, b2_ref, w3_ref, b3_ref,
                           out_ref):
    # h_ref: (TB, 512) bf16; weights bf16; biases f32; out_ref: (TB, 128) f32.
    x = h_ref[...]

    z1 = jnp.dot(x, w1_ref[...], preferred_element_type=jnp.float32) + b1_ref[...]
    a1 = jnp.maximum(z1, 0.0).astype(jnp.bfloat16)

    z2 = jnp.dot(a1, w2_ref[...], preferred_element_type=jnp.float32) + b2_ref[...]
    a2 = jnp.maximum(z2, 0.0).astype(jnp.bfloat16)

    z3 = jnp.dot(a2, w3_ref[...], preferred_element_type=jnp.float32) + b3_ref[...]
    out_ref[...] = z3.astype(out_ref.dtype)


def _round_up(x, m):
    return ((x + m - 1) // m) * m


@functools.partial(jax.jit, static_argnames=("tb",))
def label_predictor(h, w1, b1, w2, b2, w3, b3, *, tb=256):
    """h: (B, 512) float32/bfloat16.  Returns (B, 10) float32 logits."""
    B = h.shape[0]
    # Batch tile: multiple of 8 sublanes, capped at `tb` (256 feeds the 256-wide MXU
    # on v6e/v7x; stays small enough for v7x's 64 MiB VMEM).
    TB = min(tb, _round_up(B, 8))
    B_pad = _round_up(B, TB)

    # bf16 activations into the MXU; pad batch to a multiple of TB.
    h_bf = h.astype(jnp.bfloat16)
    if B_pad != B:
        h_bf = jnp.pad(h_bf, ((0, B_pad - B), (0, 0)))

    # bf16 weights (f32 accumulation in-kernel); biases stay f32.
    w1b = w1.astype(jnp.bfloat16)
    w2b = w2.astype(jnp.bfloat16)
    # Zero-pad the last layer to a lane-dense 128-wide output.
    w3b = jnp.pad(w3, ((0, 0), (0, D_OUT_PAD - D_OUT))).astype(jnp.bfloat16)
    b3p = jnp.pad(b3, ((0, 0), (0, D_OUT_PAD - D_OUT))).astype(jnp.float32)
    b1f = b1.astype(jnp.float32)
    b2f = b2.astype(jnp.float32)

    grid = (pl.cdiv(B_pad, TB),)
    const = lambda i: (0, 0)  # weights/biases: same block every grid step (resident)

    out_padded = pl.pallas_call(
        label_predictor_kernel,
        out_shape=jax.ShapeDtypeStruct((B_pad, D_OUT_PAD), jnp.float32),
        grid=grid,
        in_specs=[
            pl.BlockSpec((TB, D_IN), lambda i: (i, 0)),      # h tile
            pl.BlockSpec((D_IN, D_HID), const),              # w1
            pl.BlockSpec((1, D_HID), const),                 # b1
            pl.BlockSpec((D_HID, D_HID), const),             # w2
            pl.BlockSpec((1, D_HID), const),                 # b2
            pl.BlockSpec((D_HID, D_OUT_PAD), const),         # w3 (padded)
            pl.BlockSpec((1, D_OUT_PAD), const),             # b3 (padded)
        ],
        out_specs=pl.BlockSpec((TB, D_OUT_PAD), lambda i: (i, 0)),
        compiler_params=pltpu.CompilerParams(
            dimension_semantics=("parallel",)),
    )(h_bf, w1b, b1f, w2b, b2f, w3b, b3p)

    return out_padded[:B, :D_OUT]


def init_params(key):
    # Deterministic synthetic init (mimics PyTorch Linear uniform(-1/sqrt(fan_in), ...)).
    ks = jax.random.split(key, 6)

    def lin(kw, kb, fan_in, fan_out):
        bound = 1.0 / jnp.sqrt(fan_in)
        w = jax.random.uniform(kw, (fan_in, fan_out), jnp.float32, -bound, bound)
        b = jax.random.uniform(kb, (1, fan_out), jnp.float32, -bound, bound)
        return w, b

    w1, b1 = lin(ks[0], ks[1], D_IN, D_HID)
    w2, b2 = lin(ks[2], ks[3], D_HID, D_HID)
    w3, b3 = lin(ks[4], ks[5], D_HID, D_OUT)
    return w1, b1, w2, b2, w3, b3


def ref_forward_bf16(h, w1, b1, w2, b2, w3, b3):
    # Reference with the same bf16-input / f32-accumulate precision as the kernel.
    x = h.astype(jnp.bfloat16)
    z1 = jnp.dot(x, w1.astype(jnp.bfloat16), preferred_element_type=jnp.float32) + b1
    a1 = jnp.maximum(z1, 0.0).astype(jnp.bfloat16)
    z2 = jnp.dot(a1, w2.astype(jnp.bfloat16), preferred_element_type=jnp.float32) + b2
    a2 = jnp.maximum(z2, 0.0).astype(jnp.bfloat16)
    z3 = jnp.dot(a2, w3.astype(jnp.bfloat16), preferred_element_type=jnp.float32) + b3
    return z3


if __name__ == "__main__":
    key = jax.random.PRNGKey(0)
    k_h, k_p = jax.random.split(key)

    # Small demo batch chosen to exercise the grid (tb=8 -> 3 grid steps) and the
    # batch-padding path (20 -> 24 rows). Production use: default tb=256.
    B = 20
    h = jax.random.normal(k_h, (B, D_IN), jnp.float32)
    params = init_params(k_p)

    out = label_predictor(h, *params, tb=8)
    out = jax.block_until_ready(out)
    assert out.shape == (B, D_OUT)

    ref = ref_forward_bf16(h, *params)
    assert jnp.allclose(out, ref, atol=1e-2, rtol=1e-2), (
        float(jnp.max(jnp.abs(out - ref))))

    # Also run the default (production) tiling once to make sure it compiles.
    out2 = jax.block_until_ready(label_predictor(h, *params))
    assert jnp.allclose(out2, ref, atol=1e-2, rtol=1e-2)

    print("KERNEL_OK")
</pallas_src>

<mosaic_0001>
module attributes {stable_mosaic.version = 11 : i64} {
  func.func @label_predictor_kernel(%arg0: i32, %arg1: memref<8x512xbf16, #tpu.memory_space<vmem>>, %arg2: memref<512x512xbf16, #tpu.memory_space<vmem>>, %arg3: memref<1x512xf32, #tpu.memory_space<vmem>>, %arg4: memref<512x512xbf16, #tpu.memory_space<vmem>>, %arg5: memref<1x512xf32, #tpu.memory_space<vmem>>, %arg6: memref<512x128xbf16, #tpu.memory_space<vmem>>, %arg7: memref<1x128xf32, #tpu.memory_space<vmem>>, %arg8: memref<8x128xf32, #tpu.memory_space<vmem>>) attributes {dimension_semantics = [#tpu.dimension_semantics<parallel>], iteration_bounds = array<i64: 3>, scalar_prefetch = 0 : i64, scratch_operands = 0 : i64, tpu.core_type = #tpu.core_type<tc>, window_params = [{transform_indices = @transform_0, window_bounds = array<i64: 8, 512>}, {pipeline_mode = #tpu.pipeline_mode<synchronous>, transform_indices = @transform_1, window_bounds = array<i64: 512, 512>}, {pipeline_mode = #tpu.pipeline_mode<synchronous>, transform_indices = @transform_2, window_bounds = array<i64: 1, 512>}, {pipeline_mode = #tpu.pipeline_mode<synchronous>, transform_indices = @transform_3, window_bounds = array<i64: 512, 512>}, {pipeline_mode = #tpu.pipeline_mode<synchronous>, transform_indices = @transform_4, window_bounds = array<i64: 1, 512>}, {pipeline_mode = #tpu.pipeline_mode<synchronous>, transform_indices = @transform_5, window_bounds = array<i64: 512, 128>}, {pipeline_mode = #tpu.pipeline_mode<synchronous>, transform_indices = @transform_6, window_bounds = array<i64: 1, 128>}, {transform_indices = @transform_7, window_bounds = array<i64: 8, 128>}]} {
    %c0 = arith.constant 0 : index
    %c0_0 = arith.constant 0 : index
    %0 = vector.load %arg1[%c0, %c0_0] : memref<8x512xbf16, #tpu.memory_space<vmem>>, vector<8x512xbf16>
    %c0_1 = arith.constant 0 : index
    %c0_2 = arith.constant 0 : index
    %1 = vector.load %arg2[%c0_1, %c0_2] : memref<512x512xbf16, #tpu.memory_space<vmem>>, vector<512x512xbf16>
    %cst = arith.constant dense<0.000000e+00> : vector<8x512xf32>
    %2 = tpu.matmul %0, %1, %cst {dimension_numbers = #tpu.dot_dimension_numbers<[1], [0], [0], [1], [0, 0, 1, 1], [], []>} : vector<8x512xbf16>, vector<512x512xbf16>, vector<8x512xf32> -> vector<8x512xf32>
    %c0_3 = arith.constant 0 : index
    %c0_4 = arith.constant 0 : index
    %3 = vector.load %arg3[%c0_3, %c0_4] : memref<1x512xf32, #tpu.memory_space<vmem>>, vector<1x512xf32>
    %4 = vector.broadcast %3 : vector<1x512xf32> to vector<8x512xf32>
    %5 = arith.addf %2, %4 : vector<8x512xf32>
    %cst_5 = arith.constant 0.000000e+00 : f32
    %6 = vector.broadcast %cst_5 : f32 to vector<8x512xf32>
    %7 = arith.maximumf %5, %6 : vector<8x512xf32>
    %8 = arith.truncf %7 : vector<8x512xf32> to vector<8x512xbf16>
    %c0_6 = arith.constant 0 : index
    %c0_7 = arith.constant 0 : index
    %9 = vector.load %arg4[%c0_6, %c0_7] : memref<512x512xbf16, #tpu.memory_space<vmem>>, vector<512x512xbf16>
    %cst_8 = arith.constant dense<0.000000e+00> : vector<8x512xf32>
    %10 = tpu.matmul %8, %9, %cst_8 {dimension_numbers = #tpu.dot_dimension_numbers<[1], [0], [0], [1], [0, 0, 1, 1], [], []>} : vector<8x512xbf16>, vector<512x512xbf16>, vector<8x512xf32> -> vector<8x512xf32>
    %c0_9 = arith.constant 0 : index
    %c0_10 = arith.constant 0 : index
    %11 = vector.load %arg5[%c0_9, %c0_10] : memref<1x512xf32, #tpu.memory_space<vmem>>, vector<1x512xf32>
    %12 = vector.broadcast %11 : vector<1x512xf32> to vector<8x512xf32>
    %13 = arith.addf %10, %12 : vector<8x512xf32>
    %cst_11 = arith.constant 0.000000e+00 : f32
    %14 = vector.broadcast %cst_11 : f32 to vector<8x512xf32>
    %15 = arith.maximumf %13, %14 : vector<8x512xf32>
    %16 = arith.truncf %15 : vector<8x512xf32> to vector<8x512xbf16>
    %c0_12 = arith.constant 0 : index
    %c0_13 = arith.constant 0 : index
    %17 = vector.load %arg6[%c0_12, %c0_13] : memref<512x128xbf16, #tpu.memory_space<vmem>>, vector<512x128xbf16>
    %cst_14 = arith.constant dense<0.000000e+00> : vector<8x128xf32>
    %18 = tpu.matmul %16, %17, %cst_14 {dimension_numbers = #tpu.dot_dimension_numbers<[1], [0], [0], [1], [0, 0, 1, 1], [], []>} : vector<8x512xbf16>, vector<512x128xbf16>, vector<8x128xf32> -> vector<8x128xf32>
    %c0_15 = arith.constant 0 : index
    %c0_16 = arith.constant 0 : index
    %19 = vector.load %arg7[%c0_15, %c0_16] : memref<1x128xf32, #tpu.memory_space<vmem>>, vector<1x128xf32>
    %20 = vector.broadcast %19 : vector<1x128xf32> to vector<8x128xf32>
    %21 = arith.addf %18, %20 : vector<8x128xf32>
    %c0_17 = arith.constant 0 : index
    %c0_18 = arith.constant 0 : index
    %22 = vector.load %arg8[%c0_17, %c0_18] : memref<8x128xf32, #tpu.memory_space<vmem>>, vector<8x128xf32>
    tpu.vector_store %arg8[%c0_17, %c0_18], %21 {strides = array<i32>} : memref<8x128xf32, #tpu.memory_space<vmem>>, vector<8x128xf32>,
    return
  }
  func.func @transform_0(%arg0: i32) -> (i32, i32) {
    %c0_i32 = arith.constant 0 : i32
    %c0_i32_0 = arith.constant 0 : i32
    return %arg0, %c0_i32 : i32, i32
  }
  func.func @transform_1(%arg0: i32) -> (i32, i32) {
    %c0_i32 = arith.constant 0 : i32
    %c0_i32_0 = arith.constant 0 : i32
    %c0_i32_1 = arith.constant 0 : i32
    return %c0_i32, %c0_i32_0 : i32, i32
  }
  func.func @transform_2(%arg0: i32) -> (i32, i32) {
    %c0_i32 = arith.constant 0 : i32
    %c0_i32_0 = arith.constant 0 : i32
    %c0_i32_1 = arith.constant 0 : i32
    return %c0_i32, %c0_i32_0 : i32, i32
  }
  func.func @transform_3(%arg0: i32) -> (i32, i32) {
    %c0_i32 = arith.constant 0 : i32
    %c0_i32_0 = arith.constant 0 : i32
    %c0_i32_1 = arith.constant 0 : i32
    return %c0_i32, %c0_i32_0 : i32, i32
  }
  func.func @transform_4(%arg0: i32) -> (i32, i32) {
    %c0_i32 = arith.constant 0 : i32
    %c0_i32_0 = arith.constant 0 : i32
    %c0_i32_1 = arith.constant 0 : i32
    return %c0_i32, %c0_i32_0 : i32, i32
  }
  func.func @transform_5(%arg0: i32) -> (i32, i32) {
    %c0_i32 = arith.constant 0 : i32
    %c0_i32_0 = arith.constant 0 : i32
    %c0_i32_1 = arith.constant 0 : i32
    return %c0_i32, %c0_i32_0 : i32, i32
  }
  func.func @transform_6(%arg0: i32) -> (i32, i32) {
    %c0_i32 = arith.constant 0 : i32
    %c0_i32_0 = arith.constant 0 : i32
    %c0_i32_1 = arith.constant 0 : i32
    return %c0_i32, %c0_i32_0 : i32, i32
  }
  func.func @transform_7(%arg0: i32) -> (i32, i32) {
    %c0_i32 = arith.constant 0 : i32
    %c0_i32_0 = arith.constant 0 : i32
    return %arg0, %c0_i32 : i32, i32
  }
}

</mosaic_0001>

<bundles_post_ra>
// kernel: label_predictor.1
= control target key start
LH: loop header
LB: loop body
LE: loop exit
PB: predicated region body
PF: predicated region fallthrough
CT: control target
= control target key end

     0   :  { %s3463_s24 = smov 0   ;;  %s4402_s0 = inlined_call_operand.vmem [shape: bf16[24,512], index: 0, kind: input, shape index: {}]   ;;  %s4403_s1 = inlined_call_operand.vmem [shape: bf16[512,512], index: 1, kind: input, shape index: {}]   ;;  %s4404_s2 = inlined_call_operand.vmem [shape: f32[1,512], index: 2, kind: input, shape index: {}]   ;;  %s4405_s3 = inlined_call_operand.vmem [shape: bf16[512,512], index: 3, kind: input, shape index: {}]   ;;  %s4406_s4 = inlined_call_operand.vmem [shape: f32[1,512], index: 4, kind: input, shape index: {}]   ;;  %s4407_s5 = inlined_call_operand.vmem [shape: bf16[512,128], index: 5, kind: input, shape index: {}]   ;;  %s4408_s6 = inlined_call_operand.vmem [shape: f32[1,128], index: 6, kind: input, shape index: {}]   ;;  %s4409_s7 = inlined_call_operand.vmem [shape: f32[24,128], index: 7, kind: output, shape index: {}]  }
   0x1 LB: > { %s2615_s25 = sadd.s32 4294967295, %s3421_s24   ;;  %p2619_p0 = scmp.ge.s32.totalorder %s3421_s24, 1  ;;  %s3421_s24 = sphi %s3463_s24, %s17_s24  }
   0x2   : > { %p237_p1 = scmp.lt.s32.totalorder %s3421_s24, 4 }
   0x4   : > { %p238_p2 = pnand %p2619_p0, %p237_p1 }
   0x5   : > { %v2995_v0 = vld [vmem:[%s4403_s1 + $0x4] ss:$16 sps:$4 sm:$0xff] (!%p238_p2)   ;;  %v2997_v1 = vld [vmem:[%s4403_s1 + $0xc] ss:$16 sps:$4 sm:$0xff] (!%p238_p2)   ;;  %v2999_v2 = vld [vmem:[%s4403_s1] ss:$16 sps:$4 sm:$0xff] (!%p238_p2)  }
   0x6   : > { %241 = sbr.rel (%p238_p2) target bundleno = 858 (0x35a), region = 48  ;;  %1084 = vmatprep.subr.bf16.mxu0 (!%p238_p2), %v2995_v0  ;;  %v3000_v3 = vld [vmem:[%s4403_s1 + $0x8] ss:$16 sps:$4 sm:$0xff] (!%p238_p2)   ;;  %1166 = vmatprep.subr.bf16.mxu1 (!%p238_p2), %v2997_v1  ;;  %v3001_v4 = vld [vmem:[%s4403_s1 + $0x24] ss:$16 sps:$4 sm:$0xff] (!%p238_p2)   ;;  %p268_p3 = scmp.lt.s32.totalorder (!%p238_p2), %s2615_s25, 2 }
   0x7   : > { %1085 = vmatpush1.bf16.msra.mxu0 (!%p238_p2), %v2999_v2  ;;  %1167 = vmatpush1.bf16.msra.mxu1 (!%p238_p2), %v3000_v3  ;;  %v3003_v5 = vld [vmem:[%s4403_s1 + $0x2c] ss:$16 sps:$4 sm:$0xff] (!%p238_p2)   ;;  %v3005_v6 = vld [vmem:[%s4403_s1 + $0x20] ss:$16 sps:$4 sm:$0xff] (!%p238_p2)   ;;  %v3006_v7 = vld [vmem:[%s4403_s1 + $0x28] ss:$16 sps:$4 sm:$0xff] (!%p238_p2)  }
   0x8   : > { %1086 = vmatprep.subr.bf16.mxu0 (!%p238_p2), %v3001_v4  ;;  %1168 = vmatprep.subr.bf16.mxu1 (!%p238_p2), %v3003_v5  ;;  %v3007_v8 = vld [vmem:[%s4403_s1 + $0x44] ss:$16 sps:$4 sm:$0xff] (!%p238_p2)   ;;  %v3009_v9 = vld [vmem:[%s4403_s1 + $0x4c] ss:$16 sps:$4 sm:$0xff] (!%p238_p2)   ;;  %v3011_v10 = vld [vmem:[%s4403_s1 + $0x40] ss:$16 sps:$4 sm:$0xff] (!%p238_p2)  }
   0x9   : > { %v3012_v11 = vld [vmem:[%s4403_s1 + $0x48] ss:$16 sps:$4 sm:$0xff] (!%p238_p2)   ;;  %v3013_v12 = vld [vmem:[%s4403_s1 + $0x64] ss:$16 sps:$4 sm:$0xff] (!%p238_p2)   ;;  %v3015_v13 = vld [vmem:[%s4403_s1 + $0x6c] ss:$16 sps:$4 sm:$0xff] (!%p238_p2)  }
   0xa   : > { %v3017_v14 = vld [vmem:[%s4403_s1 + $0x60] ss:$16 sps:$4 sm:$0xff] (!%p238_p2)   ;;  %v3018_v15 = vld [vmem:[%s4403_s1 + $0x68] ss:$16 sps:$4 sm:$0xff] (!%p238_p2)   ;;  %v3019_v16 = vld [vmem:[%s4403_s1 + $0x84] ss:$16 sps:$4 sm:$0xff] (!%p238_p2)  }
   0xb   : > { %1087 = vmatpush1.bf16.msra.mxu0 (!%p238_p2), %v3005_v6  ;;  %1169 = vmatpush1.bf16.msra.mxu1 (!%p238_p2), %v3006_v7  ;;  %v3021_v17 = vld [vmem:[%s4403_s1 + $0x8c] ss:$16 sps:$4 sm:$0xff] (!%p238_p2)   ;;  %v3023_v18 = vld [vmem:[%s4403_s1 + $0x80] ss:$16 sps:$4 sm:$0xff] (!%p238_p2)   ;;  %v3024_v19 = vld [vmem:[%s4403_s1 + $0x88] ss:$16 sps:$4 sm:$0xff] (!%p238_p2)  }
   0xc   : > { %1088 = vmatprep.subr.bf16.mxu0 (!%p238_p2), %v3007_v8  ;;  %1170 = vmatprep.subr.bf16.mxu1 (!%p238_p2), %v3009_v9  ;;  %v3025_v20 = vld [vmem:[%s4403_s1 + $0xa4] ss:$16 sps:$4 sm:$0xff] (!%p238_p2)   ;;  %v3027_v21 = vld [vmem:[%s4403_s1 + $0xac] ss:$16 sps:$4 sm:$0xff] (!%p238_p2)   ;;  %v3029_v22 = vld [vmem:[%s4403_s1 + $0xa0] ss:$16 sps:$4 sm:$0xff] (!%p238_p2)  }
   0xd   : > { %v3030_v23 = vld [vmem:[%s4403_s1 + $0xa8] ss:$16 sps:$4 sm:$0xff]   ;;  %v3031_v24 = vld [vmem:[%s4403_s1 + $0xc4] ss:$16 sps:$4 sm:$0xff]   ;;  %v3033_v25 = vld [vmem:[%s4403_s1 + $0xcc] ss:$16 sps:$4 sm:$0xff]  }
   0xe   : > { %v3035_v26 = vld [vmem:[%s4403_s1 + $0xc0] ss:$16 sps:$4 sm:$0xff]   ;;  %v3036_v27 = vld [vmem:[%s4403_s1 + $0xc8] ss:$16 sps:$4 sm:$0xff]   ;;  %v3037_v28 = vld [vmem:[%s4403_s1 + $0xe4] ss:$16 sps:$4 sm:$0xff]  }
   0xf   : > { %1089 = vmatpush1.bf16.msra.mxu0 %v3011_v10  ;;  %1171 = vmatpush1.bf16.msra.mxu1 %v3012_v11  ;;  %v3039_v29 = vld [vmem:[%s4403_s1 + $0xec] ss:$16 sps:$4 sm:$0xff]   ;;  %v3041_v30 = vld [vmem:[%s4403_s1 + $0xe0] ss:$16 sps:$4 sm:$0xff]   ;;  %v3042_v31 = vld [vmem:[%s4403_s1 + $0xe8] ss:$16 sps:$4 sm:$0xff]  }
  0x10   : > { %1090 = vmatprep.subr.bf16.mxu0 %v3013_v12  ;;  %1172 = vmatprep.subr.bf16.mxu1 %v3015_v13  ;;  %v3043_v32 = vld [vmem:[%s4403_s1 + $0x104] ss:$16 sps:$4 sm:$0xff]   ;;  %v3045_v33 = vld [vmem:[%s4403_s1 + $0x10c] ss:$16 sps:$4 sm:$0xff]   ;;  %v3047_v34 = vld [vmem:[%s4403_s1 + $0x100] ss:$16 sps:$4 sm:$0xff]  }
  0x11   : > { %v3048_v35 = vld [vmem:[%s4403_s1 + $0x108] ss:$16 sps:$4 sm:$0xff]   ;;  %v3049_v36 = vld [vmem:[%s4403_s1 + $0x124] ss:$16 sps:$4 sm:$0xff]   ;;  %s4411_s25 = smov (!%p268_p3, %s2615_s25), 2 }
  0x12   : > { %v3051_v37 = vld [vmem:[%s4403_s1 + $0x12c] ss:$16 sps:$4 sm:$0xff]   ;;  %v3053_v38 = vld [vmem:[%s4403_s1 + $0x120] ss:$16 sps:$4 sm:$0xff]   ;;  %v3054_v39 = vld [vmem:[%s4403_s1 + $0x128] ss:$16 sps:$4 sm:$0xff]  }
  0x13   : > { %1091 = vmatpush1.bf16.msra.mxu0 %v3017_v14  ;;  %1173 = vmatpush1.bf16.msra.mxu1 %v3018_v15  ;;  %v3055_v40 = vld [vmem:[%s4403_s1 + $0x144] ss:$16 sps:$4 sm:$0xff]   ;;  %s2918_s22 = sshll.u32 %s4411_s25, 4  ;;  %v3057_v41 = vld [vmem:[%s4403_s1 + $0x14c] ss:$16 sps:$4 sm:$0xff]   ;;  %s2622_s23 = sshll.u32 %s4411_s25, 3 }
  0x14   : > { %1092 = vmatprep.subr.bf16.mxu0 %v3019_v16  ;;  %1174 = vmatprep.subr.bf16.mxu1 %v3021_v17  ;;  %v3059_v42 = vld [vmem:[%s4403_s1 + $0x140] ss:$16 sps:$4 sm:$0xff]   ;;  %v3060_v43 = vld [vmem:[%s4403_s1 + $0x148] ss:$16 sps:$4 sm:$0xff]   ;;  %s3613_s10 = scalar_lea.vmem %s4402_s0, %s2918_s22  ;;  %v3061_v44 = vld [vmem:[%s4403_s1 + $0x164] ss:$16 sps:$4 sm:$0xff]   ;;  %s276_s28 = scalar_lea.vmem %s4409_s7, %s2622_s23 }
  0x15   : > { %v3063_v45 = vld [vmem:[%s4403_s1 + $0x16c] ss:$16 sps:$4 sm:$0xff]   ;;  %v278_v46 = vld [vmem:[%s3613_s10] sm:$0xff]  ;;  %v3066_v49 = vld [vmem:[%s4403_s1 + $0x168] ss:$16 sps:$4 sm:$0xff]  }
  0x16   : > { %v2624_v47 = vcombine.high %v278_v46, %v278_v46  ;;  %v3065_v48 = vld [vmem:[%s4403_s1 + $0x160] ss:$16 sps:$4 sm:$0xff]   ;;  %v3067_v50 = vld [vmem:[%s4403_s1 + $0x184] ss:$16 sps:$4 sm:$0xff]   ;;  %v3069_v51 = vld [vmem:[%s4403_s1 + $0x18c] ss:$16 sps:$4 sm:$0xff]   ;;  %v2623_v5 = vcombine.low %v278_v46, %v278_v46 }
  0x17   : > { %1093 = vmatpush1.bf16.msra.mxu0 %v3023_v18  ;;  %1175 = vmatpush1.bf16.msra.mxu1 %v3024_v19  ;;  %v3071_v52 = vld [vmem:[%s4403_s1 + $0x180] ss:$16 sps:$4 sm:$0xff]   ;;  %v3072_v53 = vld [vmem:[%s4403_s1 + $0x188] ss:$16 sps:$4 sm:$0xff]   ;;  %v3073_v54 = vld [vmem:[%s4403_s1 + $0x1a4] ss:$16 sps:$4 sm:$0xff]  }
  0x18   : > { %1094 = vmatprep.subr.bf16.mxu0 %v3025_v20  ;;  %1176 = vmatprep.subr.bf16.mxu1 %v3027_v21  ;;  %v3075_v55 = vld [vmem:[%s4403_s1 + $0x1ac] ss:$16 sps:$4 sm:$0xff]   ;;  %v3077_v56 = vld [vmem:[%s4403_s1 + $0x1a0] ss:$16 sps:$4 sm:$0xff]   ;;  %v3078_v57 = vld [vmem:[%s4403_s1 + $0x1a8] ss:$16 sps:$4 sm:$0xff]  }
  0x19   : > { %1116 = vmatprep.mubr.bf16.mxu0 %v2624_v47  ;;  %1198 = vmatprep.mubr.bf16.mxu1 %v2624_v47  ;;  %v3079_v58 = vld [vmem:[%s4403_s1 + $0x1c4] ss:$16 sps:$4 sm:$0xff]   ;;  %v3081_v59 = vld [vmem:[%s4403_s1 + $0x1cc] ss:$16 sps:$4 sm:$0xff]   ;;  %v3083_v60 = vld [vmem:[%s4403_s1 + $0x1c0] ss:$16 sps:$4 sm:$0xff]  }
  0x1a   : > { %v3084_v61 = vld [vmem:[%s4403_s1 + $0x1c8] ss:$16 sps:$4 sm:$0xff]   ;;  %v3085_v62 = vld [vmem:[%s4403_s1 + $0x1e4] ss:$16 sps:$4 sm:$0xff]   ;;  %v3087_v63 = vld [vmem:[%s4403_s1 + $0x1ec] ss:$16 sps:$4 sm:$0xff]  }
  0x1b   : > { %1095 = vmatpush1.bf16.msra.mxu0 %v3029_v22  ;;  %1177 = vmatpush1.bf16.msra.mxu1 %v3030_v23  ;;  %v3089_v0 = vld [vmem:[%s4403_s1 + $0x1e0] ss:$16 sps:$4 sm:$0xff]   ;;  %v3090_v1 = vld [vmem:[%s4403_s1 + $0x1e8] ss:$16 sps:$4 sm:$0xff]   ;;  %v3096_v2 = vld [vmem:[%s4403_s1 + $0x204] ss:$16 sps:$4 sm:$0xff]  }
  0x1c   : > { %1096 = vmatprep.subr.bf16.mxu0 %v3031_v24  ;;  %1178 = vmatprep.subr.bf16.mxu1 %v3033_v25  ;;  %v3099_v3 = vld [vmem:[%s4403_s1 + $0x20c] ss:$16 sps:$4 sm:$0xff]   ;;  %v3094_v6 = vld [vmem:[%s4403_s1 + $0x200] ss:$16 sps:$4 sm:$0xff]   ;;  %v3097_v7 = vld [vmem:[%s4403_s1 + $0x208] ss:$16 sps:$4 sm:$0xff]  }
  0x1d   : > { %v3683_v4 = vld [vmem:[%s3613_s10 + $0x8] sm:$0xff]  ;;  %v3102_v8 = vld [vmem:[%s4403_s1 + $0x224] ss:$16 sps:$4 sm:$0xff]   ;;  %v3100_v11 = vld [vmem:[%s4403_s1 + $0x220] ss:$16 sps:$4 sm:$0xff]  }
  0x1e   : > { %v3105_v9 = vld [vmem:[%s4403_s1 + $0x22c] ss:$16 sps:$4 sm:$0xff]   ;;  %v2626_v10 = vcombine.high %v3683_v4, %v3683_v4  ;;  %v3103_v12 = vld [vmem:[%s4403_s1 + $0x228] ss:$16 sps:$4 sm:$0xff]   ;;  %v3108_v13 = vld [vmem:[%s4403_s1 + $0x244] ss:$16 sps:$4 sm:$0xff]  }
  0x1f   : > { %1097 = vmatpush1.bf16.msra.mxu0 %v3035_v26  ;;  %1179 = vmatpush1.bf16.msra.mxu1 %v3036_v27  ;;  %v3111_v14 = vld [vmem:[%s4403_s1 + $0x24c] ss:$16 sps:$4 sm:$0xff]   ;;  %v3106_v15 = vld [vmem:[%s4403_s1 + $0x240] ss:$16 sps:$4 sm:$0xff]   ;;  %v3109_v16 = vld [vmem:[%s4403_s1 + $0x248] ss:$16 sps:$4 sm:$0xff]  }
  0x20   : > { %1098 = vmatprep.subr.bf16.mxu0 %v3037_v28  ;;  %1180 = vmatprep.subr.bf16.mxu1 %v3039_v29  ;;  %v3114_v17 = vld [vmem:[%s4403_s1 + $0x264] ss:$16 sps:$4 sm:$0xff]   ;;  %v3117_v18 = vld [vmem:[%s4403_s1 + $0x26c] ss:$16 sps:$4 sm:$0xff]   ;;  %v3112_v19 = vld [vmem:[%s4403_s1 + $0x260] ss:$16 sps:$4 sm:$0xff]  }
  0x21   : > { %v3115_v20 = vld [vmem:[%s4403_s1 + $0x268] ss:$16 sps:$4 sm:$0xff]   ;;  %v3120_v21 = vld [vmem:[%s4403_s1 + $0x284] ss:$16 sps:$4 sm:$0xff]   ;;  %v3123_v22 = vld [vmem:[%s4403_s1 + $0x28c] ss:$16 sps:$4 sm:$0xff]  }
  0x22   : > { %v3118_v23 = vld [vmem:[%s4403_s1 + $0x280] ss:$16 sps:$4 sm:$0xff]   ;;  %v3121_v24 = vld [vmem:[%s4403_s1 + $0x288] ss:$16 sps:$4 sm:$0xff]   ;;  %v3126_v25 = vld [vmem:[%s4403_s1 + $0x2a4] ss:$16 sps:$4 sm:$0xff]  }
  0x23   : > { %1099 = vmatpush1.bf16.msra.mxu0 %v3041_v30  ;;  %1181 = vmatpush1.bf16.msra.mxu1 %v3042_v31  ;;  %v3129_v26 = vld [vmem:[%s4403_s1 + $0x2ac] ss:$16 sps:$4 sm:$0xff]   ;;  %v3124_v27 = vld [vmem:[%s4403_s1 + $0x2a0] ss:$16 sps:$4 sm:$0xff]   ;;  %v3127_v28 = vld [vmem:[%s4403_s1 + $0x2a8] ss:$16 sps:$4 sm:$0xff]  }
  0x24   : > { %1100 = vmatprep.subr.bf16.mxu0 %v3043_v32  ;;  %1182 = vmatprep.subr.bf16.mxu1 %v3045_v33  ;;  %v3132_v29 = vld [vmem:[%s4403_s1 + $0x2c4] ss:$16 sps:$4 sm:$0xff]   ;;  %v3135_v30 = vld [vmem:[%s4403_s1 + $0x2cc] ss:$16 sps:$4 sm:$0xff]   ;;  %v3130_v31 = vld [vmem:[%s4403_s1 + $0x2c0] ss:$16 sps:$4 sm:$0xff]  }
  0x25   : > { %v3133_v32 = vld [vmem:[%s4403_s1 + $0x2c8] ss:$16 sps:$4 sm:$0xff]   ;;  %v3138_v33 = vld [vmem:[%s4403_s1 + $0x2e4] ss:$16 sps:$4 sm:$0xff]   ;;  %v3159_v46 = vld [vmem:[%s4403_s1 + $0x34c] ss:$16 sps:$4 sm:$0xff]  }
  0x26   : > { %v3154_v47 = vld [vmem:[%s4403_s1 + $0x340] ss:$16 sps:$4 sm:$0xff]  }
  0x27   : > { %1101 = vmatpush1.bf16.msra.mxu0 %v3047_v34  ;;  %1183 = vmatpush1.bf16.msra.mxu1 %v3048_v35  ;;  %v3141_v34 = vld [vmem:[%s4403_s1 + $0x2ec] ss:$16 sps:$4 sm:$0xff]   ;;  %v3136_v35 = vld [vmem:[%s4403_s1 + $0x2e0] ss:$16 sps:$4 sm:$0xff]  }
  0x28   : > { %1102 = vmatprep.subr.bf16.mxu0 %v3049_v36  ;;  %1184 = vmatprep.subr.bf16.mxu1 %v3051_v37  ;;  %v3139_v36 = vld [vmem:[%s4403_s1 + $0x2e8] ss:$16 sps:$4 sm:$0xff]   ;;  %v3144_v37 = vld [vmem:[%s4403_s1 + $0x304] ss:$16 sps:$4 sm:$0xff]  }
  0x2b   : > { %1103 = vmatpush1.bf16.msra.mxu0 %v3053_v38  ;;  %1185 = vmatpush1.bf16.msra.mxu1 %v3054_v39  ;;  %v3147_v38 = vld [vmem:[%s4403_s1 + $0x30c] ss:$16 sps:$4 sm:$0xff]   ;;  %v3142_v39 = vld [vmem:[%s4403_s1 + $0x300] ss:$16 sps:$4 sm:$0xff]  }
  0x2c   : > { %1104 = vmatprep.subr.bf16.mxu0 %v3055_v40  ;;  %1186 = vmatprep.subr.bf16.mxu1 %v3057_v41  ;;  %v3145_v40 = vld [vmem:[%s4403_s1 + $0x308] ss:$16 sps:$4 sm:$0xff]   ;;  %v3150_v41 = vld [vmem:[%s4403_s1 + $0x324] ss:$16 sps:$4 sm:$0xff]  }
  0x2f   : > { %1105 = vmatpush1.bf16.msra.mxu0 %v3059_v42  ;;  %1187 = vmatpush1.bf16.msra.mxu1 %v3060_v43  ;;  %v3153_v42 = vld [vmem:[%s4403_s1 + $0x32c] ss:$16 sps:$4 sm:$0xff]   ;;  %v3148_v43 = vld [vmem:[%s4403_s1 + $0x320] ss:$16 sps:$4 sm:$0xff]  }
  0x30   : > { %1106 = vmatprep.subr.bf16.mxu0 %v3061_v44  ;;  %1188 = vmatprep.subr.bf16.mxu1 %v3063_v45  ;;  %v3151_v44 = vld [vmem:[%s4403_s1 + $0x328] ss:$16 sps:$4 sm:$0xff]   ;;  %v3156_v45 = vld [vmem:[%s4403_s1 + $0x344] ss:$16 sps:$4 sm:$0xff]  }
  0x33   : > { %1107 = vmatpush1.bf16.msra.mxu0 %v3065_v48  ;;  %1189 = vmatpush1.bf16.msra.mxu1 %v3066_v49  ;;  %v3157_v48 = vld [vmem:[%s4403_s1 + $0x348] ss:$16 sps:$4 sm:$0xff]   ;;  %v3162_v49 = vld [vmem:[%s4403_s1 + $0x364] ss:$16 sps:$4 sm:$0xff]  }
  0x34   : > { %1108 = vmatprep.subr.bf16.mxu0 %v3067_v50  ;;  %1190 = vmatprep.subr.bf16.mxu1 %v3069_v51  ;;  %v3165_v50 = vld [vmem:[%s4403_s1 + $0x36c] ss:$16 sps:$4 sm:$0xff]   ;;  %v3160_v51 = vld [vmem:[%s4403_s1 + $0x360] ss:$16 sps:$4 sm:$0xff]  }
  0x37   : > { %1109 = vmatpush1.bf16.msra.mxu0 %v3071_v52  ;;  %1191 = vmatpush1.bf16.msra.mxu1 %v3072_v53  ;;  %v3163_v52 = vld [vmem:[%s4403_s1 + $0x368] ss:$16 sps:$4 sm:$0xff]   ;;  %v3168_v53 = vld [vmem:[%s4403_s1 + $0x384] ss:$16 sps:$4 sm:$0xff]  }
  0x38   : > { %1110 = vmatprep.subr.bf16.mxu0 %v3073_v54  ;;  %1192 = vmatprep.subr.bf16.mxu1 %v3075_v55  ;;  %v3171_v54 = vld [vmem:[%s4403_s1 + $0x38c] ss:$16 sps:$4 sm:$0xff]   ;;  %v3166_v55 = vld [vmem:[%s4403_s1 + $0x380] ss:$16 sps:$4 sm:$0xff]  }
  0x3b   : > { %1111 = vmatpush1.bf16.msra.mxu0 %v3077_v56  ;;  %1193 = vmatpush1.bf16.msra.mxu1 %v3078_v57  ;;  %v3169_v56 = vld [vmem:[%s4403_s1 + $0x388] ss:$16 sps:$4 sm:$0xff]   ;;  %v3174_v57 = vld [vmem:[%s4403_s1 + $0x3a4] ss:$16 sps:$4 sm:$0xff]  }
  0x3c   : > { %1112 = vmatprep.subr.bf16.mxu0 %v3079_v58  ;;  %1194 = vmatprep.subr.bf16.mxu1 %v3081_v59  ;;  %v3177_v58 = vld [vmem:[%s4403_s1 + $0x3ac] ss:$16 sps:$4 sm:$0xff]   ;;  %v3172_v59 = vld [vmem:[%s4403_s1 + $0x3a0] ss:$16 sps:$4 sm:$0xff]  }
  0x3f   : > { %1113 = vmatpush1.bf16.msra.mxu0 %v3083_v60  ;;  %1195 = vmatpush1.bf16.msra.mxu1 %v3084_v61  ;;  %v3175_v60 = vld [vmem:[%s4403_s1 + $0x3a8] ss:$16 sps:$4 sm:$0xff]   ;;  %v3180_v61 = vld [vmem:[%s4403_s1 + $0x3c4] ss:$16 sps:$4 sm:$0xff]  }
  0x40   : > { %1114 = vmatprep.subr.bf16.mxu0 %v3085_v62  ;;  %1196 = vmatprep.subr.bf16.mxu1 %v3087_v63  ;;  %v3183_v62 = vld [vmem:[%s4403_s1 + $0x3cc] ss:$16 sps:$4 sm:$0xff]   ;;  %v3178_v63 = vld [vmem:[%s4403_s1 + $0x3c0] ss:$16 sps:$4 sm:$0xff]  }
  0x43   : > { %1115 = vmatpush1.bf16.msra.mxu0 %v3089_v0  ;;  %1197 = vmatpush1.bf16.msra.mxu1 %v3090_v1  ;;  %v3181_v0 = vld [vmem:[%s4403_s1 + $0x3c8] ss:$16 sps:$4 sm:$0xff]   ;;  %v3186_v1 = vld [vmem:[%s4403_s1 + $0x3e4] ss:$16 sps:$4 sm:$0xff]  }
  0x44   : > { %1125 = vmatprep.subr.bf16.mxu0 %v3096_v2  ;;  %1207 = vmatprep.subr.bf16.mxu1 %v3099_v3  ;;  %v3189_v2 = vld [vmem:[%s4403_s1 + $0x3ec] ss:$16 sps:$4 sm:$0xff]   ;;  %v3184_v3 = vld [vmem:[%s4403_s1 + $0x3e0] ss:$16 sps:$4 sm:$0xff]  }
  0x46   : > { %1117 = vmatmul.mubr.bf16.vlgmr.msra.gmra.mrb[0].mxu0 %v2623_v5  ;;  %1199 = vmatmul.mubr.bf16.vlgmr.msra.gmra.mrb[0].mxu1 %v2623_v5  ;;  %v3187_v5 = vld [vmem:[%s4403_s1 + $0x3e8] ss:$16 sps:$4 sm:$0xff]  }
  0x47   : > { %1126 = vmatpush1.bf16.msra.mxu0 %v3094_v6  ;;  %1208 = vmatpush1.bf16.msra.mxu1 %v3097_v7  ;;  %v3193_v6 = vld [vmem:[%s4405_s3 + $0x4] ss:$16 sps:$4 sm:$0xff]   ;;  %v3196_v7 = vld [vmem:[%s4405_s3 + $0xc] ss:$16 sps:$4 sm:$0xff]  }
  0x48   : > { %1127 = vmatprep.subr.bf16.mxu0 %v3102_v8  ;;  %1209 = vmatprep.subr.bf16.mxu1 %v3105_v9  ;;  %v3191_v8 = vld [vmem:[%s4405_s3] ss:$16 sps:$4 sm:$0xff]   ;;  %v3194_v9 = vld [vmem:[%s4405_s3 + $0x8] ss:$16 sps:$4 sm:$0xff]  }
  0x49   : > { %1157 = vmatprep.mubr.bf16.mxu0 %v2626_v10  ;;  %1239 = vmatprep.mubr.bf16.mxu1 %v2626_v10  ;;  %v2625_v10 = vcombine.low %v3683_v4, %v3683_v4  ;;  %v3200_v4 = vld [vmem:[%s4405_s3 + $0x28] ss:$16 sps:$4 sm:$0xff]  }
  0x4b   : > { %1128 = vmatpush1.bf16.msra.mxu0 %v3100_v11  ;;  %1210 = vmatpush1.bf16.msra.mxu1 %v3103_v12  ;;  %v3199_v11 = vld [vmem:[%s4405_s3 + $0x24] ss:$16 sps:$4 sm:$0xff]   ;;  %v3202_v12 = vld [vmem:[%s4405_s3 + $0x2c] ss:$16 sps:$4 sm:$0xff]  }
  0x4c   : > { %1129 = vmatprep.subr.bf16.mxu0 %v3108_v13  ;;  %1211 = vmatprep.subr.bf16.mxu1 %v3111_v14  ;;  %v3197_v13 = vld [vmem:[%s4405_s3 + $0x20] ss:$16 sps:$4 sm:$0xff]   ;;  %v3205_v14 = vld [vmem:[%s4405_s3 + $0x44] ss:$16 sps:$4 sm:$0xff]  }
  0x4f   : > { %1130 = vmatpush1.bf16.msra.mxu0 %v3106_v15  ;;  %1212 = vmatpush1.bf16.msra.mxu1 %v3109_v16  ;;  %v3208_v15 = vld [vmem:[%s4405_s3 + $0x4c] ss:$16 sps:$4 sm:$0xff]   ;;  %v3203_v16 = vld [vmem:[%s4405_s3 + $0x40] ss:$16 sps:$4 sm:$0xff]  }
  0x50   : > { %1131 = vmatprep.subr.bf16.mxu0 %v3114_v17  ;;  %1213 = vmatprep.subr.bf16.mxu1 %v3117_v18  ;;  %v3206_v17 = vld [vmem:[%s4405_s3 + $0x48] ss:$16 sps:$4 sm:$0xff]   ;;  %v3211_v18 = vld [vmem:[%s4405_s3 + $0x64] ss:$16 sps:$4 sm:$0xff]  }
  0x53   : > { %1132 = vmatpush1.bf16.msra.mxu0 %v3112_v19  ;;  %1214 = vmatpush1.bf16.msra.mxu1 %v3115_v20  ;;  %v3214_v19 = vld [vmem:[%s4405_s3 + $0x6c] ss:$16 sps:$4 sm:$0xff]   ;;  %v3209_v20 = vld [vmem:[%s4405_s3 + $0x60] ss:$16 sps:$4 sm:$0xff]  }
  0x54   : > { %1133 = vmatprep.subr.bf16.mxu0 %v3120_v21  ;;  %1215 = vmatprep.subr.bf16.mxu1 %v3123_v22  ;;  %v3212_v21 = vld [vmem:[%s4405_s3 + $0x68] ss:$16 sps:$4 sm:$0xff]   ;;  %v3217_v22 = vld [vmem:[%s4405_s3 + $0x84] ss:$16 sps:$4 sm:$0xff]  }
  0x57   : > { %1134 = vmatpush1.bf16.msra.mxu0 %v3118_v23  ;;  %1216 = vmatpush1.bf16.msra.mxu1 %v3121_v24  ;;  %v3220_v23 = vld [vmem:[%s4405_s3 + $0x8c] ss:$16 sps:$4 sm:$0xff]   ;;  %v3215_v24 = vld [vmem:[%s4405_s3 + $0x80] ss:$16 sps:$4 sm:$0xff]  }
  0x58   : > { %1135 = vmatprep.subr.bf16.mxu0 %v3126_v25  ;;  %1217 = vmatprep.subr.bf16.mxu1 %v3129_v26  ;;  %v3218_v25 = vld [vmem:[%s4405_s3 + $0x88] ss:$16 sps:$4 sm:$0xff]   ;;  %v3223_v26 = vld [vmem:[%s4405_s3 + $0xa4] ss:$16 sps:$4 sm:$0xff]  }
  0x5b   : > { %1136 = vmatpush1.bf16.msra.mxu0 %v3124_v27  ;;  %1218 = vmatpush1.bf16.msra.mxu1 %v3127_v28  ;;  %v3226_v27 = vld [vmem:[%s4405_s3 + $0xac] ss:$16 sps:$4 sm:$0xff]   ;;  %v3221_v28 = vld [vmem:[%s4405_s3 + $0xa0] ss:$16 sps:$4 sm:$0xff]  }
  0x5c   : > { %1137 = vmatprep.subr.bf16.mxu0 %v3132_v29  ;;  %1219 = vmatprep.subr.bf16.mxu1 %v3135_v30  ;;  %v3224_v29 = vld [vmem:[%s4405_s3 + $0xa8] ss:$16 sps:$4 sm:$0xff]   ;;  %v3229_v30 = vld [vmem:[%s4405_s3 + $0xc4] ss:$16 sps:$4 sm:$0xff]  }
  0x5f   : > { %1138 = vmatpush1.bf16.msra.mxu0 %v3130_v31  ;;  %1220 = vmatpush1.bf16.msra.mxu1 %v3133_v32  ;;  %v3232_v31 = vld [vmem:[%s4405_s3 + $0xcc] ss:$16 sps:$4 sm:$0xff]   ;;  %v3227_v32 = vld [vmem:[%s4405_s3 + $0xc0] ss:$16 sps:$4 sm:$0xff]  }
  0x60   : > { %1139 = vmatprep.subr.bf16.mxu0 %v3138_v33  ;;  %1221 = vmatprep.subr.bf16.mxu1 %v3141_v34  ;;  %v3230_v33 = vld [vmem:[%s4405_s3 + $0xc8] ss:$16 sps:$4 sm:$0xff]   ;;  %v3235_v34 = vld [vmem:[%s4405_s3 + $0xe4] ss:$16 sps:$4 sm:$0xff]  }
  0x63   : > { %1140 = vmatpush1.bf16.msra.mxu0 %v3136_v35  ;;  %1222 = vmatpush1.bf16.msra.mxu1 %v3139_v36  ;;  %v3238_v35 = vld [vmem:[%s4405_s3 + $0xec] ss:$16 sps:$4 sm:$0xff]   ;;  %v3233_v36 = vld [vmem:[%s4405_s3 + $0xe0] ss:$16 sps:$4 sm:$0xff]  }
  0x64   : > { %1141 = vmatprep.subr.bf16.mxu0 %v3144_v37  ;;  %1223 = vmatprep.subr.bf16.mxu1 %v3147_v38  ;;  %v3236_v37 = vld [vmem:[%s4405_s3 + $0xe8] ss:$16 sps:$4 sm:$0xff]   ;;  %v3241_v38 = vld [vmem:[%s4405_s3 + $0x104] ss:$16 sps:$4 sm:$0xff]  }
  0x67   : > { %1142 = vmatpush1.bf16.msra.mxu0 %v3142_v39  ;;  %1224 = vmatpush1.bf16.msra.mxu1 %v3145_v40  ;;  %v3244_v39 = vld [vmem:[%s4405_s3 + $0x10c] ss:$16 sps:$4 sm:$0xff]   ;;  %v3239_v40 = vld [vmem:[%s4405_s3 + $0x100] ss:$16 sps:$4 sm:$0xff]  }
  0x68   : > { %1143 = vmatprep.subr.bf16.mxu0 %v3150_v41  ;;  %1225 = vmatprep.subr.bf16.mxu1 %v3153_v42  ;;  %v3242_v41 = vld [vmem:[%s4405_s3 + $0x108] ss:$16 sps:$4 sm:$0xff]   ;;  %v3247_v42 = vld [vmem:[%s4405_s3 + $0x124] ss:$16 sps:$4 sm:$0xff]  }
  0x6b   : > { %1144 = vmatpush1.bf16.msra.mxu0 %v3148_v43  ;;  %1226 = vmatpush1.bf16.msra.mxu1 %v3151_v44  ;;  %v3250_v43 = vld [vmem:[%s4405_s3 + $0x12c] ss:$16 sps:$4 sm:$0xff]   ;;  %v3245_v44 = vld [vmem:[%s4405_s3 + $0x120] ss:$16 sps:$4 sm:$0xff]  }
  0x6c   : > { %1145 = vmatprep.subr.bf16.mxu0 %v3156_v45  ;;  %1227 = vmatprep.subr.bf16.mxu1 %v3159_v46  ;;  %v3248_v45 = vld [vmem:[%s4405_s3 + $0x128] ss:$16 sps:$4 sm:$0xff]   ;;  %v3253_v46 = vld [vmem:[%s4405_s3 + $0x144] ss:$16 sps:$4 sm:$0xff]  }
  0x6f   : > { %1146 = vmatpush1.bf16.msra.mxu0 %v3154_v47  ;;  %1228 = vmatpush1.bf16.msra.mxu1 %v3157_v48  ;;  %v3256_v47 = vld [vmem:[%s4405_s3 + $0x14c] ss:$16 sps:$4 sm:$0xff]   ;;  %v3251_v48 = vld [vmem:[%s4405_s3 + $0x140] ss:$16 sps:$4 sm:$0xff]  }
  0x70   : > { %1147 = vmatprep.subr.bf16.mxu0 %v3162_v49  ;;  %1229 = vmatprep.subr.bf16.mxu1 %v3165_v50  ;;  %v3254_v49 = vld [vmem:[%s4405_s3 + $0x148] ss:$16 sps:$4 sm:$0xff]   ;;  %v3259_v50 = vld [vmem:[%s4405_s3 + $0x164] ss:$16 sps:$4 sm:$0xff]  }
  0x73   : > { %1148 = vmatpush1.bf16.msra.mxu0 %v3160_v51  ;;  %1230 = vmatpush1.bf16.msra.mxu1 %v3163_v52  ;;  %v3262_v51 = vld [vmem:[%s4405_s3 + $0x16c] ss:$16 sps:$4 sm:$0xff]   ;;  %v3257_v52 = vld [vmem:[%s4405_s3 + $0x160] ss:$16 sps:$4 sm:$0xff]  }
  0x74   : > { %1149 = vmatprep.subr.bf16.mxu0 %v3168_v53  ;;  %1231 = vmatprep.subr.bf16.mxu1 %v3171_v54  ;;  %v3260_v53 = vld [vmem:[%s4405_s3 + $0x168] ss:$16 sps:$4 sm:$0xff]   ;;  %v3265_v54 = vld [vmem:[%s4405_s3 + $0x184] ss:$16 sps:$4 sm:$0xff]  }
  0x77   : > { %1150 = vmatpush1.bf16.msra.mxu0 %v3166_v55  ;;  %1232 = vmatpush1.bf16.msra.mxu1 %v3169_v56  ;;  %v3268_v55 = vld [vmem:[%s4405_s3 + $0x18c] ss:$16 sps:$4 sm:$0xff]   ;;  %v3263_v56 = vld [vmem:[%s4405_s3 + $0x180] ss:$16 sps:$4 sm:$0xff]  }
  0x78   : > { %1151 = vmatprep.subr.bf16.mxu0 %v3174_v57  ;;  %1233 = vmatprep.subr.bf16.mxu1 %v3177_v58  ;;  %v3266_v57 = vld [vmem:[%s4405_s3 + $0x188] ss:$16 sps:$4 sm:$0xff]   ;;  %v3271_v58 = vld [vmem:[%s4405_s3 + $0x1a4] ss:$16 sps:$4 sm:$0xff]  }
  0x7b   : > { %1152 = vmatpush1.bf16.msra.mxu0 %v3172_v59  ;;  %1234 = vmatpush1.bf16.msra.mxu1 %v3175_v60  ;;  %v3274_v59 = vld [vmem:[%s4405_s3 + $0x1ac] ss:$16 sps:$4 sm:$0xff]   ;;  %v3269_v60 = vld [vmem:[%s4405_s3 + $0x1a0] ss:$16 sps:$4 sm:$0xff]  }
  0x7c   : > { %1153 = vmatprep.subr.bf16.mxu0 %v3180_v61  ;;  %1235 = vmatprep.subr.bf16.mxu1 %v3183_v62  ;;  %v3272_v61 = vld [vmem:[%s4405_s3 + $0x1a8] ss:$16 sps:$4 sm:$0xff]   ;;  %v3277_v62 = vld [vmem:[%s4405_s3 + $0x1c4] ss:$16 sps:$4 sm:$0xff]  }
  0x7f   : > { %1154 = vmatpush1.bf16.msra.mxu0 %v3178_v63  ;;  %1236 = vmatpush1.bf16.msra.mxu1 %v3181_v0  ;;  %v3280_v63 = vld [vmem:[%s4405_s3 + $0x1cc] ss:$16 sps:$4 sm:$0xff]   ;;  %v3275_v0 = vld [vmem:[%s4405_s3 + $0x1c0] ss:$16 sps:$4 sm:$0xff]  }
  0x80   : > { %1155 = vmatprep.subr.bf16.mxu0 %v3186_v1  ;;  %1237 = vmatprep.subr.bf16.mxu1 %v3189_v2  ;;  %v3278_v1 = vld [vmem:[%s4405_s3 + $0x1c8] ss:$16 sps:$4 sm:$0xff]   ;;  %v3283_v2 = vld [vmem:[%s4405_s3 + $0x1e4] ss:$16 sps:$4 sm:$0xff]  }
  0x83   : > { %1156 = vmatpush1.bf16.msra.mxu0 %v3184_v3  ;;  %1238 = vmatpush1.bf16.msra.mxu1 %v3187_v5  ;;  %v3286_v3 = vld [vmem:[%s4405_s3 + $0x1ec] ss:$16 sps:$4 sm:$0xff]   ;;  %v3281_v5 = vld [vmem:[%s4405_s3 + $0x1e0] ss:$16 sps:$4 sm:$0xff]  }
  0x84   : > { %2046 = vmatprep.subr.bf16.mxu0 %v3193_v6  ;;  %2128 = vmatprep.subr.bf16.mxu1 %v3196_v7  ;;  %v3284_v6 = vld [vmem:[%s4405_s3 + $0x1e8] ss:$16 sps:$4 sm:$0xff]   ;;  %v3289_v7 = vld [vmem:[%s4405_s3 + $0x204] ss:$16 sps:$4 sm:$0xff]  }
  0x86   : > { %1158 = vmatmul.mubr.bf16.vlgmr.msra.gmra.mrb[0].mxu0 %v2625_v10  ;;  %1240 = vmatmul.mubr.bf16.vlgmr.msra.gmra.mrb[0].mxu1 %v2625_v10 }
  0x87   : > { %2047 = vmatpush1.bf16.msra.mxu0 %v3191_v8  ;;  %2129 = vmatpush1.bf16.msra.mxu1 %v3194_v9  ;;  %v3292_v8 = vld [vmem:[%s4405_s3 + $0x20c] ss:$16 sps:$4 sm:$0xff]   ;;  %v410_v9 = vlaneseq }
  0x88   : > { %2048 = vmatprep.subr.bf16.mxu0 %v3199_v11  ;;  %2130 = vmatprep.subr.bf16.mxu1 %v3202_v12  ;;  %v4079_v12 = vld [vmem:[%s4404_s2] sm:$0xf] }
  0x89   : > { %v4073_v10 = vshrl.u32 %v410_v9, 7  ;;  %v3349_v9 = vld [vmem:[%s4405_s3 + $0x344] ss:$16 sps:$4 sm:$0xff]  }
  0x8b   : > { %2049 = vmatpush1.bf16.msra.mxu0 %v3197_v13  ;;  %2131 = vmatpush1.bf16.msra.mxu1 %v3200_v4  ;;  %v412_v11 = vsub.s32 0, %v4073_v10  ;;  %v416_v13 = vsub.s32 1, %v4073_v10  ;;  %v424_v4 = vsub.s32 3, %v4073_v10 }
  0x8c   : > { %2050 = vmatprep.subr.bf16.mxu0 %v3205_v14  ;;  %2132 = vmatprep.subr.bf16.mxu1 %v3208_v15 }
  0x8d   : > { %v413_v14 = vrot.slane %v4079_v12, %v412_v11  ;;  %v417_v15 = vrot.slane %v4079_v12, %v416_v13 }
  0x8f   : > { %2051 = vmatpush1.bf16.msra.mxu0 %v3203_v16  ;;  %2133 = vmatpush1.bf16.msra.mxu1 %v3206_v17  ;;  %v425_v16 = vrot.slane %v4079_v12, %v424_v4 }
  0x90   : > { %2052 = vmatprep.subr.bf16.mxu0 %v3211_v18  ;;  %2134 = vmatprep.subr.bf16.mxu1 %v3214_v19 }
  0x93   : > { %2053 = vmatpush1.bf16.msra.mxu0 %v3209_v20  ;;  %2135 = vmatpush1.bf16.msra.mxu1 %v3212_v21 }
  0x94   : > { %2054 = vmatprep.subr.bf16.mxu0 %v3217_v22  ;;  %2136 = vmatprep.subr.bf16.mxu1 %v3220_v23 }
  0x97   : > { %2055 = vmatpush1.bf16.msra.mxu0 %v3215_v24  ;;  %2137 = vmatpush1.bf16.msra.mxu1 %v3218_v25 }
  0x98   : > { %2056 = vmatprep.subr.bf16.mxu0 %v3223_v26  ;;  %2138 = vmatprep.subr.bf16.mxu1 %v3226_v27 }
  0x9b   : > { %2057 = vmatpush1.bf16.msra.mxu0 %v3221_v28  ;;  %2139 = vmatpush1.bf16.msra.mxu1 %v3224_v29 }
  0x9c   : > { %2058 = vmatprep.subr.bf16.mxu0 %v3229_v30  ;;  %2140 = vmatprep.subr.bf16.mxu1 %v3232_v31 }
  0x9f   : > { %2059 = vmatpush1.bf16.msra.mxu0 %v3227_v32  ;;  %2141 = vmatpush1.bf16.msra.mxu1 %v3230_v33  ;;  %v3287_v32 = vld [vmem:[%s4405_s3 + $0x200] ss:$16 sps:$4 sm:$0xff]   ;;  %v3290_v33 = vld [vmem:[%s4405_s3 + $0x208] ss:$16 sps:$4 sm:$0xff]  }
  0xa0   : > { %2060 = vmatprep.subr.bf16.mxu0 %v3235_v34  ;;  %2142 = vmatprep.subr.bf16.mxu1 %v3238_v35  ;;  %v3295_v35 = vld [vmem:[%s4405_s3 + $0x224] ss:$16 sps:$4 sm:$0xff]  }
  0xa3   : > { %2061 = vmatpush1.bf16.msra.mxu0 %v3233_v36  ;;  %2143 = vmatpush1.bf16.msra.mxu1 %v3236_v37  ;;  %v3298_v36 = vld [vmem:[%s4405_s3 + $0x22c] ss:$16 sps:$4 sm:$0xff]  }
  0xa4   : > { %2062 = vmatprep.subr.bf16.mxu0 %v3241_v38  ;;  %2144 = vmatprep.subr.bf16.mxu1 %v3244_v39  ;;  %v3293_v38 = vld [vmem:[%s4405_s3 + $0x220] ss:$16 sps:$4 sm:$0xff]   ;;  %v3296_v39 = vld [vmem:[%s4405_s3 + $0x228] ss:$16 sps:$4 sm:$0xff]  }
  0xa7   : > { %2063 = vmatpush1.bf16.msra.mxu0 %v3239_v40  ;;  %2145 = vmatpush1.bf16.msra.mxu1 %v3242_v41  ;;  %v3301_v40 = vld [vmem:[%s4405_s3 + $0x244] ss:$16 sps:$4 sm:$0xff]   ;;  %v3304_v41 = vld [vmem:[%s4405_s3 + $0x24c] ss:$16 sps:$4 sm:$0xff]  }
  0xa8   : > { %2064 = vmatprep.subr.bf16.mxu0 %v3247_v42  ;;  %2146 = vmatprep.subr.bf16.mxu1 %v3250_v43  ;;  %v3299_v42 = vld [vmem:[%s4405_s3 + $0x240] ss:$16 sps:$4 sm:$0xff]   ;;  %v3302_v43 = vld [vmem:[%s4405_s3 + $0x248] ss:$16 sps:$4 sm:$0xff]  }
  0xab   : > { %2065 = vmatpush1.bf16.msra.mxu0 %v3245_v44  ;;  %2147 = vmatpush1.bf16.msra.mxu1 %v3248_v45  ;;  %v3307_v44 = vld [vmem:[%s4405_s3 + $0x264] ss:$16 sps:$4 sm:$0xff]   ;;  %v3310_v45 = vld [vmem:[%s4405_s3 + $0x26c] ss:$16 sps:$4 sm:$0xff]  }
  0xac   : > { %2066 = vmatprep.subr.bf16.mxu0 %v3253_v46  ;;  %2148 = vmatprep.subr.bf16.mxu1 %v3256_v47  ;;  %v3305_v46 = vld [vmem:[%s4405_s3 + $0x260] ss:$16 sps:$4 sm:$0xff]   ;;  %v3308_v47 = vld [vmem:[%s4405_s3 + $0x268] ss:$16 sps:$4 sm:$0xff]  }
  0xaf   : > { %2067 = vmatpush1.bf16.msra.mxu0 %v3251_v48  ;;  %2149 = vmatpush1.bf16.msra.mxu1 %v3254_v49  ;;  %v3313_v48 = vld [vmem:[%s4405_s3 + $0x284] ss:$16 sps:$4 sm:$0xff]   ;;  %v3316_v49 = vld [vmem:[%s4405_s3 + $0x28c] ss:$16 sps:$4 sm:$0xff]  }
  0xb0   : > { %2068 = vmatprep.subr.bf16.mxu0 %v3259_v50  ;;  %2150 = vmatprep.subr.bf16.mxu1 %v3262_v51  ;;  %v3311_v50 = vld [vmem:[%s4405_s3 + $0x280] ss:$16 sps:$4 sm:$0xff]   ;;  %v3314_v51 = vld [vmem:[%s4405_s3 + $0x288] ss:$16 sps:$4 sm:$0xff]  }
  0xb3   : > { %2069 = vmatpush1.bf16.msra.mxu0 %v3257_v52  ;;  %2151 = vmatpush1.bf16.msra.mxu1 %v3260_v53  ;;  %v3319_v52 = vld [vmem:[%s4405_s3 + $0x2a4] ss:$16 sps:$4 sm:$0xff]   ;;  %v3322_v53 = vld [vmem:[%s4405_s3 + $0x2ac] ss:$16 sps:$4 sm:$0xff]  }
  0xb4   : > { %2070 = vmatprep.subr.bf16.mxu0 %v3265_v54  ;;  %2152 = vmatprep.subr.bf16.mxu1 %v3268_v55  ;;  %v3317_v54 = vld [vmem:[%s4405_s3 + $0x2a0] ss:$16 sps:$4 sm:$0xff]   ;;  %v3320_v55 = vld [vmem:[%s4405_s3 + $0x2a8] ss:$16 sps:$4 sm:$0xff]  }
  0xb7   : > { %2071 = vmatpush1.bf16.msra.mxu0 %v3263_v56  ;;  %2153 = vmatpush1.bf16.msra.mxu1 %v3266_v57  ;;  %v3325_v56 = vld [vmem:[%s4405_s3 + $0x2c4] ss:$16 sps:$4 sm:$0xff]   ;;  %v3328_v57 = vld [vmem:[%s4405_s3 + $0x2cc] ss:$16 sps:$4 sm:$0xff]  }
  0xb8   : > { %2072 = vmatprep.subr.bf16.mxu0 %v3271_v58  ;;  %2154 = vmatprep.subr.bf16.mxu1 %v3274_v59  ;;  %v3323_v58 = vld [vmem:[%s4405_s3 + $0x2c0] ss:$16 sps:$4 sm:$0xff]   ;;  %v3326_v59 = vld [vmem:[%s4405_s3 + $0x2c8] ss:$16 sps:$4 sm:$0xff]  }
  0xbb   : > { %2073 = vmatpush1.bf16.msra.mxu0 %v3269_v60  ;;  %2155 = vmatpush1.bf16.msra.mxu1 %v3272_v61  ;;  %v3331_v60 = vld [vmem:[%s4405_s3 + $0x2e4] ss:$16 sps:$4 sm:$0xff]   ;;  %v3334_v61 = vld [vmem:[%s4405_s3 + $0x2ec] ss:$16 sps:$4 sm:$0xff]  }
  0xbc   : > { %2074 = vmatprep.subr.bf16.mxu0 %v3277_v62  ;;  %2156 = vmatprep.subr.bf16.mxu1 %v3280_v63  ;;  %v3329_v62 = vld [vmem:[%s4405_s3 + $0x2e0] ss:$16 sps:$4 sm:$0xff]   ;;  %v3332_v63 = vld [vmem:[%s4405_s3 + $0x2e8] ss:$16 sps:$4 sm:$0xff]  }
  0xbf   : > { %2075 = vmatpush1.bf16.msra.mxu0 %v3275_v0  ;;  %2157 = vmatpush1.bf16.msra.mxu1 %v3278_v1  ;;  %v3337_v0 = vld [vmem:[%s4405_s3 + $0x304] ss:$16 sps:$4 sm:$0xff]   ;;  %v3340_v1 = vld [vmem:[%s4405_s3 + $0x30c] ss:$16 sps:$4 sm:$0xff]  }
  0xc0   : > { %2076 = vmatprep.subr.bf16.mxu0 %v3283_v2  ;;  %2158 = vmatprep.subr.bf16.mxu1 %v3286_v3  ;;  %v3335_v2 = vld [vmem:[%s4405_s3 + $0x300] ss:$16 sps:$4 sm:$0xff]   ;;  %v3338_v3 = vld [vmem:[%s4405_s3 + $0x308] ss:$16 sps:$4 sm:$0xff]  }
  0xc3   : > { %2077 = vmatpush1.bf16.msra.mxu0 %v3281_v5  ;;  %2159 = vmatpush1.bf16.msra.mxu1 %v3284_v6  ;;  %v3343_v5 = vld [vmem:[%s4405_s3 + $0x324] ss:$16 sps:$4 sm:$0xff]   ;;  %v3346_v6 = vld [vmem:[%s4405_s3 + $0x32c] ss:$16 sps:$4 sm:$0xff]  }
  0xc4   : > { %2087 = vmatprep.subr.bf16.mxu0 %v3289_v7  ;;  %2169 = vmatprep.subr.bf16.mxu1 %v3292_v8  ;;  %v3341_v7 = vld [vmem:[%s4405_s3 + $0x320] ss:$16 sps:$4 sm:$0xff]   ;;  %v3344_v8 = vld [vmem:[%s4405_s3 + $0x328] ss:$16 sps:$4 sm:$0xff]  }
 0x159   : > { %v1159_v17 = vpop.f32.mrb[0].mxu0  ;;  %v4092_v18 = vpop.f32.mrb[0].mxu1 }
 0x15a   : > { %v2963_v19 = vadd.f32 %v1159_v17, %v413_v14  ;;  %v1161_v20 = vpop.f32.mrb[1].mxu0  ;;  %v1243_v21 = vpop.f32.mrb[1].mxu1  ;;  %v3352_v14 = vld [vmem:[%s4405_s3 + $0x34c] ss:$16 sps:$4 sm:$0xff]   ;;  %v3355_v17 = vld [vmem:[%s4405_s3 + $0x364] ss:$16 sps:$4 sm:$0xff]  }
 0x15b   : > { %v2964_v22 = vadd.f32 %v1161_v20, %v417_v15  ;;  %v2966_v23 = vadd.f32 %v1243_v21, %v425_v16  ;;  %v1163_v24 = vpop.f32.mrb[2].mxu0  ;;  %v1245_v25 = vpop.f32.mrb[2].mxu1  ;;  %v3347_v15 = vld [vmem:[%s4405_s3 + $0x340] ss:$16 sps:$4 sm:$0xff]   ;;  %v3350_v16 = vld [vmem:[%s4405_s3 + $0x348] ss:$16 sps:$4 sm:$0xff]  }
 0x15c   : > { %v1248_v26 = vmax.f32 %v2963_v19, 0.0  ;;  %v1164_v27 = vpop.f32.mrb[3].mxu0  ;;  %v1246_v28 = vpop.f32.mrb[3].mxu1  ;;  %v3358_v19 = vld [vmem:[%s4405_s3 + $0x36c] ss:$16 sps:$4 sm:$0xff]  }
 0x15d   : > { %v1249_v29 = vmax.f32 %v2964_v22, 0.0  ;;  %v1251_v30 = vmax.f32 %v2966_v23, 0.0  ;;  %v3353_v20 = vld [vmem:[%s4405_s3 + $0x360] ss:$16 sps:$4 sm:$0xff]   ;;  %v3356_v21 = vld [vmem:[%s4405_s3 + $0x368] ss:$16 sps:$4 sm:$0xff]  }
 0x15e   : > { %v1252_v34 = vpack.c.bf16 %v1248_v26, %v1248_v26  ;;  %v3361_v22 = vld [vmem:[%s4405_s3 + $0x384] ss:$16 sps:$4 sm:$0xff]   ;;  %v3364_v23 = vld [vmem:[%s4405_s3 + $0x38c] ss:$16 sps:$4 sm:$0xff]   ;;  %v3359_v24 = vld [vmem:[%s4405_s3 + $0x380] ss:$16 sps:$4 sm:$0xff]  }
 0x15f   : > { %v1253_v31 = vpack.c.bf16 %v1249_v29, %v1249_v29  ;;  %v1255_v37 = vpack.c.bf16 %v1251_v30, %v1251_v30  ;;  %v3362_v25 = vld [vmem:[%s4405_s3 + $0x388] ss:$16 sps:$4 sm:$0xff]   ;;  %v420_v26 = vsub.s32 2, %v4073_v10  ;;  %v3367_v27 = vld [vmem:[%s4405_s3 + $0x3a4] ss:$16 sps:$4 sm:$0xff]  }
 0x160   : > { %v3370_v28 = vld [vmem:[%s4405_s3 + $0x3ac] ss:$16 sps:$4 sm:$0xff]   ;;  %v3365_v29 = vld [vmem:[%s4405_s3 + $0x3a0] ss:$16 sps:$4 sm:$0xff]   ;;  %v3368_v30 = vld [vmem:[%s4405_s3 + $0x3a8] ss:$16 sps:$4 sm:$0xff]  }
 0x161   : > { %2078 = vmatprep.mubr.bf16.mxu0 %v1253_v31  ;;  %2160 = vmatprep.mubr.bf16.mxu1 %v1253_v31  ;;  %v421_v31 = vrot.slane %v4079_v12, %v420_v26  ;;  %v3374_v12 = vld [vmem:[%s4405_s3 + $0x3c8] ss:$16 sps:$4 sm:$0xff]  }
 0x162   : > { %2079 = vmatmul.mubr.bf16.vlgmr.msra.gmra.mrb[4].mxu0 %v1252_v34  ;;  %2161 = vmatmul.mubr.bf16.vlgmr.msra.gmra.mrb[4].mxu1 %v1252_v34  ;;  %v3371_v34 = vld [vmem:[%s4405_s3 + $0x3c0] ss:$16 sps:$4 sm:$0xff]  }
 0x163   : > { %2088 = vmatpush1.bf16.msra.mxu0 %v3287_v32  ;;  %2170 = vmatpush1.bf16.msra.mxu1 %v3290_v33  ;;  %v3373_v32 = vld [vmem:[%s4405_s3 + $0x3c4] ss:$16 sps:$4 sm:$0xff]   ;;  %v3376_v33 = vld [vmem:[%s4405_s3 + $0x3cc] ss:$16 sps:$4 sm:$0xff]  }
 0x164   : > { %2119 = vmatprep.mubr.bf16.mxu0 %v1255_v37  ;;  %2201 = vmatprep.mubr.bf16.mxu1 %v1255_v37  ;;  %v3382_v37 = vld [vmem:[%s4405_s3 + $0x3ec] ss:$16 sps:$4 sm:$0xff]  }
 0x165   : > { %2089 = vmatprep.subr.bf16.mxu0 %v3295_v35  ;;  %2171 = vmatprep.subr.bf16.mxu1 %v3298_v36  ;;  %v2965_v35 = vadd.f32 %v4092_v18, %v421_v31  ;;  %v3379_v36 = vld [vmem:[%s4405_s3 + $0x3e4] ss:$16 sps:$4 sm:$0xff]   ;;  %v3380_v18 = vld [vmem:[%s4405_s3 + $0x3e8] ss:$16 sps:$4 sm:$0xff]  }
 0x167   : > { %2090 = vmatpush1.bf16.msra.mxu0 %v3293_v38  ;;  %2172 = vmatpush1.bf16.msra.mxu1 %v3296_v39  ;;  %v3377_v38 = vld [vmem:[%s4405_s3 + $0x3e0] ss:$16 sps:$4 sm:$0xff]   ;;  %v1250_v39 = vmax.f32 %v2965_v35, 0.0 }
 0x168   : > { %2091 = vmatprep.subr.bf16.mxu0 %v3301_v40  ;;  %2173 = vmatprep.subr.bf16.mxu1 %v3304_v41  ;;  %v3383_v40 = vld [vmem:[%s4407_s5 + $0x40] sm:$0xff]  }
 0x169   : > { %v3384_v41 = vld [vmem:[%s4407_s5 + $0xc0] sm:$0xff]  }
 0x16b   : > { %2092 = vmatpush1.bf16.msra.mxu0 %v3299_v42  ;;  %2174 = vmatpush1.bf16.msra.mxu1 %v3302_v43  ;;  %v3385_v42 = vld [vmem:[%s4407_s5] sm:$0xff]  }
 0x16c   : > { %2093 = vmatprep.subr.bf16.mxu0 %v3307_v44  ;;  %2175 = vmatprep.subr.bf16.mxu1 %v3310_v45  ;;  %v3386_v43 = vld [vmem:[%s4407_s5 + $0x80] sm:$0xff]   ;;  %v1254_v44 = vpack.c.bf16 %v1250_v39, %v1250_v39  ;;  %v3387_v45 = vld [vmem:[%s4407_s5 + $0x48] sm:$0xff]  }
 0x16f   : > { %2094 = vmatpush1.bf16.msra.mxu0 %v3305_v46  ;;  %2176 = vmatpush1.bf16.msra.mxu1 %v3308_v47  ;;  %v3388_v46 = vld [vmem:[%s4407_s5 + $0xc8] sm:$0xff]  }
 0x170   : > { %2095 = vmatprep.subr.bf16.mxu0 %v3313_v48  ;;  %2177 = vmatprep.subr.bf16.mxu1 %v3316_v49  ;;  %v3389_v47 = vld [vmem:[%s4407_s5 + $0x8] sm:$0xff]   ;;  %v3391_v49 = vld [vmem:[%s4407_s5 + $0x50] sm:$0xff]  }
 0x171   : > { %v3390_v48 = vld [vmem:[%s4407_s5 + $0x88] sm:$0xff]  }
 0x173   : > { %2096 = vmatpush1.bf16.msra.mxu0 %v3311_v50  ;;  %2178 = vmatpush1.bf16.msra.mxu1 %v3314_v51  ;;  %v3392_v50 = vld [vmem:[%s4407_s5 + $0xd0] sm:$0xff]  }
 0x174   : > { %2097 = vmatprep.subr.bf16.mxu0 %v3319_v52  ;;  %2179 = vmatprep.subr.bf16.mxu1 %v3322_v53  ;;  %v3393_v51 = vld [vmem:[%s4407_s5 + $0x10] sm:$0xff]   ;;  %v3395_v53 = vld [vmem:[%s4407_s5 + $0x58] sm:$0xff]  }
 0x175   : > { %v3394_v52 = vld [vmem:[%s4407_s5 + $0x90] sm:$0xff]  }
 0x177   : > { %2098 = vmatpush1.bf16.msra.mxu0 %v3317_v54  ;;  %2180 = vmatpush1.bf16.msra.mxu1 %v3320_v55  ;;  %v3396_v54 = vld [vmem:[%s4407_s5 + $0xd8] sm:$0xff]  }
 0x178   : > { %2099 = vmatprep.subr.bf16.mxu0 %v3325_v56  ;;  %2181 = vmatprep.subr.bf16.mxu1 %v3328_v57  ;;  %v3397_v55 = vld [vmem:[%s4407_s5 + $0x18] sm:$0xff]   ;;  %v3399_v57 = vld [vmem:[%s4407_s5 + $0x60] sm:$0xff]  }
 0x179   : > { %v3398_v56 = vld [vmem:[%s4407_s5 + $0x98] sm:$0xff]  }
 0x17b   : > { %2100 = vmatpush1.bf16.msra.mxu0 %v3323_v58  ;;  %2182 = vmatpush1.bf16.msra.mxu1 %v3326_v59  ;;  %v3400_v58 = vld [vmem:[%s4407_s5 + $0xe0] sm:$0xff]  }
 0x17c   : > { %2101 = vmatprep.subr.bf16.mxu0 %v3331_v60  ;;  %2183 = vmatprep.subr.bf16.mxu1 %v3334_v61  ;;  %v3401_v59 = vld [vmem:[%s4407_s5 + $0x20] sm:$0xff]   ;;  %v3403_v61 = vld [vmem:[%s4407_s5 + $0x68] sm:$0xff]  }
 0x17d   : > { %v3402_v60 = vld [vmem:[%s4407_s5 + $0xa0] sm:$0xff]  }
 0x17f   : > { %2102 = vmatpush1.bf16.msra.mxu0 %v3329_v62  ;;  %2184 = vmatpush1.bf16.msra.mxu1 %v3332_v63  ;;  %v3404_v62 = vld [vmem:[%s4407_s5 + $0xe8] sm:$0xff]  }
 0x180   : > { %2103 = vmatprep.subr.bf16.mxu0 %v3337_v0  ;;  %2185 = vmatprep.subr.bf16.mxu1 %v3340_v1  ;;  %v3405_v63 = vld [vmem:[%s4407_s5 + $0x28] sm:$0xff]   ;;  %v3407_v1 = vld [vmem:[%s4407_s5 + $0x70] sm:$0xff]  }
 0x181   : > { %v3406_v0 = vld [vmem:[%s4407_s5 + $0xa8] sm:$0xff]  }
 0x183   : > { %2104 = vmatpush1.bf16.msra.mxu0 %v3335_v2  ;;  %2186 = vmatpush1.bf16.msra.mxu1 %v3338_v3  ;;  %v3408_v2 = vld [vmem:[%s4407_s5 + $0xf0] sm:$0xff]  }
 0x184   : > { %2105 = vmatprep.subr.bf16.mxu0 %v3343_v5  ;;  %2187 = vmatprep.subr.bf16.mxu1 %v3346_v6  ;;  %v3409_v3 = vld [vmem:[%s4407_s5 + $0x30] sm:$0xff]   ;;  %v3411_v6 = vld [vmem:[%s4407_s5 + $0x78] sm:$0xff]  }
 0x185   : > { %v3410_v5 = vld [vmem:[%s4407_s5 + $0xb0] sm:$0xff]  }
 0x187   : > { %2106 = vmatpush1.bf16.msra.mxu0 %v3341_v7  ;;  %2188 = vmatpush1.bf16.msra.mxu1 %v3344_v8  ;;  %v3412_v7 = vld [vmem:[%s4407_s5 + $0xf8] sm:$0xff]  }
 0x188   : > { %2107 = vmatprep.subr.bf16.mxu0 %v3349_v9  ;;  %2189 = vmatprep.subr.bf16.mxu1 %v3352_v14  ;;  %v3413_v8 = vld [vmem:[%s4407_s5 + $0x38] sm:$0xff]   ;;  %v1384_v14 = vld [vmem:[%s4406_s4] sm:$0xf] }
 0x189   : > { %v3414_v9 = vld [vmem:[%s4407_s5 + $0xb8] sm:$0xff]  }
 0x18b   : > { %2108 = vmatpush1.bf16.msra.mxu0 %v3347_v15  ;;  %2190 = vmatpush1.bf16.msra.mxu1 %v3350_v16  ;;  %v1389_v15 = vrot.slane %v1384_v14, %v412_v11  ;;  %v1397_v16 = vrot.slane %v1384_v14, %v420_v26 }
 0x18c   : > { %2109 = vmatprep.subr.bf16.mxu0 %v3355_v17  ;;  %2191 = vmatprep.subr.bf16.mxu1 %v3358_v19  ;;  %v1393_v17 = vrot.slane %v1384_v14, %v416_v13  ;;  %v1401_v19 = vrot.slane %v1384_v14, %v424_v4 }
 0x18f   : > { %2110 = vmatpush1.bf16.msra.mxu0 %v3353_v20  ;;  %2192 = vmatpush1.bf16.msra.mxu1 %v3356_v21 }
 0x190   : > { %2111 = vmatprep.subr.bf16.mxu0 %v3361_v22  ;;  %2193 = vmatprep.subr.bf16.mxu1 %v3364_v23 }
 0x193   : > { %2112 = vmatpush1.bf16.msra.mxu0 %v3359_v24  ;;  %2194 = vmatpush1.bf16.msra.mxu1 %v3362_v25 }
 0x194   : > { %2113 = vmatprep.subr.bf16.mxu0 %v3367_v27  ;;  %2195 = vmatprep.subr.bf16.mxu1 %v3370_v28 }
 0x197   : > { %2114 = vmatpush1.bf16.msra.mxu0 %v3365_v29  ;;  %2196 = vmatpush1.bf16.msra.mxu1 %v3368_v30 }
 0x198   : > { %2115 = vmatprep.subr.bf16.mxu0 %v3373_v32  ;;  %2197 = vmatprep.subr.bf16.mxu1 %v3376_v33 }
 0x19b   : > { %2116 = vmatpush1.bf16.msra.mxu0 %v3371_v34  ;;  %2198 = vmatpush1.bf16.msra.mxu1 %v3374_v12 }
 0x19c   : > { %2117 = vmatprep.subr.bf16.mxu0 %v3379_v36  ;;  %2199 = vmatprep.subr.bf16.mxu1 %v3382_v37  ;;  %v2883_v37 = vld [vmem:[%s4408_s6] ss:$0 sm:$0xff] }
 0x19f   : > { %2118 = vmatpush1.bf16.msra.mxu0 %v3377_v38  ;;  %2200 = vmatpush1.bf16.msra.mxu1 %v3380_v18 }
 0x1a0   : > { %2919 = vmatprep.subr.bf16.mxu0 %v3383_v40  ;;  %2941 = vmatprep.subr.bf16.mxu1 %v3384_v41 }
 0x1a2   : > { %2120 = vmatmul.mubr.bf16.vlgmr.msra.gmra.mrb[4].mxu0 %v1254_v44  ;;  %2202 = vmatmul.mubr.bf16.vlgmr.msra.gmra.mrb[4].mxu1 %v1254_v44 }
 0x1a3   : > { %2920 = vmatpush3.bf16.msra.mxu0 %v3385_v42  ;;  %2942 = vmatpush3.bf16.msra.mxu1 %v3386_v43 }
 0x1a4   : > { %2921 = vmatprep.subr.bf16.mxu0 %v3387_v45  ;;  %2943 = vmatprep.subr.bf16.mxu1 %v3388_v46 }
 0x1a7   : > { %2922 = vmatpush3.bf16.msra.mxu0 %v3389_v47  ;;  %2944 = vmatpush3.bf16.msra.mxu1 %v3390_v48 }
 0x1a8   : > { %2923 = vmatprep.subr.bf16.mxu0 %v3391_v49  ;;  %2945 = vmatprep.subr.bf16.mxu1 %v3392_v50 }
 0x1ab   : > { %2924 = vmatpush3.bf16.msra.mxu0 %v3393_v51  ;;  %2946 = vmatpush3.bf16.msra.mxu1 %v3394_v52 }
 0x1ac   : > { %2925 = vmatprep.subr.bf16.mxu0 %v3395_v53  ;;  %2947 = vmatprep.subr.bf16.mxu1 %v3396_v54 }
 0x1af   : > { %2926 = vmatpush3.bf16.msra.mxu0 %v3397_v55  ;;  %2948 = vmatpush3.bf16.msra.mxu1 %v3398_v56 }
 0x1b0   : > { %2927 = vmatprep.subr.bf16.mxu0 %v3399_v57  ;;  %2949 = vmatprep.subr.bf16.mxu1 %v3400_v58 }
 0x1b3   : > { %2928 = vmatpush3.bf16.msra.mxu0 %v3401_v59  ;;  %2950 = vmatpush3.bf16.msra.mxu1 %v3402_v60 }
 0x1b4   : > { %2929 = vmatprep.subr.bf16.mxu0 %v3403_v61  ;;  %2951 = vmatprep.subr.bf16.mxu1 %v3404_v62 }
 0x1b7   : > { %2930 = vmatpush3.bf16.msra.mxu0 %v3405_v63  ;;  %2952 = vmatpush3.bf16.msra.mxu1 %v3406_v0 }
 0x1b8   : > { %2931 = vmatprep.subr.bf16.mxu0 %v3407_v1  ;;  %2953 = vmatprep.subr.bf16.mxu1 %v3408_v2 }
 0x1bb   : > { %2932 = vmatpush3.bf16.msra.mxu0 %v3409_v3  ;;  %2954 = vmatpush3.bf16.msra.mxu1 %v3410_v5 }
 0x1bc   : > { %2933 = vmatprep.subr.bf16.mxu0 %v3411_v6  ;;  %2955 = vmatprep.subr.bf16.mxu1 %v3412_v7 }
 0x1bf   : > { %2934 = vmatpush3.bf16.msra.mxu0 %v3413_v8  ;;  %2956 = vmatpush3.bf16.msra.mxu1 %v3414_v9 }
 0x275   : > { %v2121_v20 = vpop.f32.mrb[4].mxu0  ;;  %v2203_v21 = vpop.f32.mrb[4].mxu1 }
 0x276   : > { %v2967_v22 = vadd.f32 %v2121_v20, %v1389_v15  ;;  %v2969_v23 = vadd.f32 %v2203_v21, %v1397_v16  ;;  %v2123_v24 = vpop.f32.mrb[5].mxu0  ;;  %v2205_v25 = vpop.f32.mrb[5].mxu1 }
 0x277   : > { %v2968_v27 = vadd.f32 %v2123_v24, %v1393_v17  ;;  %v2970_v28 = vadd.f32 %v2205_v25, %v1401_v19  ;;  %v2125_v29 = vpop.f32.mrb[6].mxu0  ;;  %v2207_v30 = vpop.f32.mrb[6].mxu1 }
 0x278   : > { %v2210_v11 = vmax.f32 %v2967_v22, 0.0  ;;  %v2212_v31 = vmax.f32 %v2969_v23, 0.0  ;;  %v2126_v32 = vpop.f32.mrb[7].mxu0  ;;  %v2208_v26 = vpop.f32.mrb[7].mxu1 }
 0x279   : > { %v2211_v33 = vmax.f32 %v2968_v27, 0.0  ;;  %v2213_v13 = vmax.f32 %v2970_v28, 0.0 }
 0x27a   : > { %v2214_v4 = vpack.c.bf16 %v2210_v11, %v2210_v11  ;;  %v2216_v12 = vpack.c.bf16 %v2212_v31, %v2212_v31 }
 0x27b   : > { %v2215_v34 = vpack.c.bf16 %v2211_v33, %v2211_v33  ;;  %v2217_v10 = vpack.c.bf16 %v2213_v13, %v2213_v13 }
 0x27d   : > { %2513 = vmatprep.mubr.bf16.mxu0 %v2215_v34  ;;  %2553 = vmatprep.mubr.bf16.mxu1 %v2217_v10 }
 0x27e   : > { %2514 = vmatmul.mubr.bf16.vlgmr.msra.gmra.mrb[8].mxu0 %v2214_v4  ;;  %2554 = vmatmul.mubr.bf16.vlgmr.msra.gmra.mrb[8].mxu1 %v2216_v12 }
 0x351   : > { %v2935_v35 = vpop.f32.mrb[8].mxu0  ;;  %v2957_v36 = vpop.f32.mrb[8].mxu1 }
 0x352   : > { %v2936_v38 = vpop.f32.mrb[9].mxu0  ;;  %v2958_v18 = vpop.f32.mrb[9].mxu1 }
 0x353   : > { %v2937_v39 = vadd.f32 %v2936_v38, %v2935_v35  ;;  %v2959_v40 = vadd.f32 %v2958_v18, %v2957_v36  ;;  %v2938_v41 = vpop.f32.mrb[10].mxu0  ;;  %v2960_v42 = vpop.f32.mrb[10].mxu1 }
 0x354   : > { %v2939_v43 = vpop.f32.mrb[11].mxu0  ;;  %v2961_v44 = vpop.f32.mrb[11].mxu1 }
 0x355   : > { %v2516_v45 = vadd.f32 %v2937_v39, %v2883_v37 }
 0x357   : > { %v2556_v46 = vadd.f32 %v2959_v40, %v2516_v45 }
 0x359   : > { %2561 = vst [vmem:[%s276_s28] sm:$0xff] %v2556_v46 }
 0x35a PF: > { %s17_s24 = sadd.s32 1, %s3421_s24  }
 0x35b   : > { %p14_p4 = scmp.ge.s32.totalorder %s17_s24, 5  }
 0x35d   :  { %16 = sbr.rel (!%p14_p4) target bundleno = 1 (0x1), region = 78 }

</bundles_post_ra>
